<compile_context>
chip_gen: v7x
topology: tpu7x:2x2x1
jax: 0.10.0
libtpu: 0.0.40
codegen_flags: <defaults>
</compile_context>

<pallas_src>
import functools

import numpy as np
import jax
import jax.numpy as jnp
from jax.experimental import pallas as pl
from jax.experimental.pallas import tpu as pltpu


def _round_up(x, m):
    return (x + m - 1) // m * m


# ---------------------------------------------------------------------------
# Host-side preprocessing: ConvTranspose1d -> dense matrix, pad + pack.
# ---------------------------------------------------------------------------

def _convtranspose1d_as_matrix(w, b, l_in, stride, padding):
    """w: (C_in, C_out, K) (torch ConvTranspose1d layout), b: (C_out,).

    Returns (M, b_flat, l_out) with M of shape (C_in*L_in, C_out*L_out) such
    that flatten_CL(y) = flatten_CL(x) @ M + b_flat reproduces ConvTranspose1d
    exactly (row-major (C, L) flattening, matching torch .view)."""
    w = np.asarray(w, np.float32)
    b = np.asarray(b, np.float32)
    c_in, c_out, k = w.shape
    l_out = (l_in - 1) * stride - 2 * padding + (k - 1) + 1
    m = np.zeros((c_in, l_in, c_out, l_out), np.float32)
    for kk in range(k):
        for li in range(l_in):
            lo = li * stride - padding + kk
            if 0 <= lo < l_out:
                m[:, li, :, lo] = w[:, :, kk]
    m = m.reshape(c_in * l_in, c_out * l_out)
    b_flat = np.repeat(b, l_out)  # bias broadcast over positions, (C,L) order
    return m, b_flat, l_out


def pack_decoder_params(conv_params, end_conv_size, stride, padding,
                        dot_dtype=jnp.bfloat16):
    """Fold every transposed-conv layer into a dense matrix, zero-pad the
    feature dims to lane-dense widths (final layer: per-channel 128-aligned
    columns) and pack everything into one weight and one bias buffer."""
    l = end_conv_size
    mats, biases = [], []
    for (w, b) in conv_params:
        m, bf, l = _convtranspose1d_as_matrix(w, b, l, stride, padding)
        mats.append(m)
        biases.append(bf)
    c_last = int(conv_params[-1][0].shape[1])
    l_final = l

    # Final layer: per-channel, 128-aligned output column layout so the kernel
    # output is directly (B, c_out, per_ch).  Padded columns keep zero weights
    # and zero bias, so padded lanes stay exactly zero through ReLU.
    per_ch = _round_up(l_final, 128)
    m_last = mats[-1]
    m_last_p = np.zeros((m_last.shape[0], c_last * per_ch), np.float32)
    b_last_p = np.zeros((c_last * per_ch,), np.float32)
    for c in range(c_last):
        m_last_p[:, c * per_ch:c * per_ch + l_final] = \
            m_last[:, c * l_final:(c + 1) * l_final]
        b_last_p[c * per_ch:c * per_ch + l_final] = \
            biases[-1][c * l_final:(c + 1) * l_final]
    mats[-1] = m_last_p
    biases[-1] = b_last_p

    n = len(mats)
    in_true = [m.shape[0] for m in mats]
    out_true = [m.shape[1] for m in mats]
    out_pad = [_round_up(o, 128) for o in out_true]          # lane-dense hidden/out
    in0_pad = _round_up(in_true[0], 8)                       # sublane-aligned input
    in_pad = [in0_pad] + out_pad[:-1]

    rows = max(in_pad)
    cols = max(out_pad)
    wp = np.zeros((n, rows, cols), np.float32)
    bp = np.zeros((n, 1, cols), np.float32)
    for i, (m, bf) in enumerate(zip(mats, biases)):
        wp[i, :m.shape[0], :m.shape[1]] = m
        bp[i, 0, :bf.shape[0]] = bf

    meta = dict(
        layer_dims=tuple(zip(in_pad, out_pad)),   # (din, dout) per layer (padded)
        in0=in_true[0], in0_pad=in0_pad,
        out_pad=out_pad[-1],
        c_out=c_last, l_out=l_final, per_ch=per_ch,
    )
    return (jnp.asarray(wp, dtype=dot_dtype),     # MXU operand dtype (bf16 default)
            jnp.asarray(bp, dtype=jnp.float32),   # bias stays f32
            meta)


# ---------------------------------------------------------------------------
# Fused kernel: (x @ W_l + b_l) -> ReLU, for every transposed-conv layer.
# ---------------------------------------------------------------------------

def _decoder_mlp_kernel(x_ref, w_ref, b_ref, o_ref, *, layer_dims, dot_dtype):
    h = x_ref[...]                                       # (bb, in0_pad), dot_dtype
    for l, (din, dout) in enumerate(layer_dims):
        w = w_ref[l, :din, :dout]                        # static, tile-aligned slice
        acc = jnp.dot(h.astype(dot_dtype), w,
                      preferred_element_type=jnp.float32)   # MXU, f32 accumulate
        acc = acc + b_ref[l, :, :dout]                   # bias add in f32
        h = jnp.maximum(acc, 0.0)                        # ReLU after EVERY conv (incl. last)
    o_ref[...] = h.astype(o_ref.dtype)


def decoder_forward(x, packed, *, block_batch=1024, dot_dtype=None,
                    out_dtype=jnp.float32):
    """x: (B, C0*end_conv_size) flat latent; returns (B, C_out, L_final)."""
    wp, bp, meta = packed
    if dot_dtype is None:
        dot_dtype = wp.dtype
    B = x.shape[0]
    in0, in0_pad = meta["in0"], meta["in0_pad"]
    out_pad = meta["out_pad"]
    c_out, l_out, per_ch = meta["c_out"], meta["l_out"], meta["per_ch"]
    assert x.shape[1] == in0, (x.shape, in0)

    # Batch tile: multiple of 8, capped at block_batch; when B permits, chosen
    # so the batch grid has >=4 steps (v7x: 2 cores x >=2 pipelined steps).
    bb = max(8, min(_round_up(block_batch, 8), _round_up(pl.cdiv(B, 4), 8)))
    b_pad = _round_up(B, bb)
    grid = (b_pad // bb,)

    # Zero-pad batch rows (no partial blocks) and the input feature dim to the
    # sublane-aligned width the packed layer-0 weights expect.
    xp = jnp.zeros((b_pad, in0_pad), dot_dtype)
    xp = xp.at[:B, :in0].set(x.astype(dot_dtype))

    kernel = functools.partial(_decoder_mlp_kernel,
                               layer_dims=meta["layer_dims"],
                               dot_dtype=dot_dtype)

    flops = 2 * b_pad * sum(d_in * d_out for d_in, d_out in meta["layer_dims"])
    bytes_accessed = int(
        b_pad * in0_pad * jnp.dtype(dot_dtype).itemsize
        + b_pad * out_pad * jnp.dtype(out_dtype).itemsize
        + wp.size * jnp.dtype(wp.dtype).itemsize
        + bp.size * 4)
    cost = pl.CostEstimate(flops=flops, transcendentals=0,
                           bytes_accessed=bytes_accessed)

    out = pl.pallas_call(
        kernel,
        out_shape=jax.ShapeDtypeStruct((b_pad, out_pad), out_dtype),
        grid_spec=pltpu.PrefetchScalarGridSpec(
            num_scalar_prefetch=0,
            grid=grid,
            in_specs=[
                pl.BlockSpec((bb, in0_pad), lambda i: (i, 0)),   # x: tiled over batch
                pl.BlockSpec(wp.shape, lambda i: (0, 0, 0)),      # packed weights: resident
                pl.BlockSpec(bp.shape, lambda i: (0, 0, 0)),      # packed biases: resident
            ],
            out_specs=pl.BlockSpec((bb, out_pad), lambda i: (i, 0)),
        ),
        compiler_params=pltpu.CompilerParams(
            dimension_semantics=("parallel",)),
        cost_estimate=cost,
    )(xp, wp, bp)

    # (b_pad, c_out*per_ch) -> (b_pad, c_out, per_ch) is a free (bitcast)
    # reshape; the only remaining copy is the last-dim slice to the true L.
    out = out.reshape(b_pad, c_out, per_ch)[:B, :, :l_out]
    return out


# ---------------------------------------------------------------------------
# Pure-JAX reference (direct transposed-conv semantics) + deterministic init.
# ---------------------------------------------------------------------------

def _ref_convtranspose1d(x, w, b, stride, padding):
    B, c_in, l_in = x.shape
    _, c_out, k = w.shape
    l_full = (l_in - 1) * stride + k
    y = jnp.zeros((B, c_out, l_full), jnp.float32)
    for kk in range(k):
        contrib = jnp.einsum("bil,io->bol", x, w[:, :, kk])
        y = y.at[:, :, kk:kk + (l_in - 1) * stride + 1:stride].add(contrib)
    l_out = l_full - 2 * padding
    return y[:, :, padding:padding + l_out] + b[None, :, None]


def decoder_reference(x, conv_params, end_conv_size, stride, padding):
    B = x.shape[0]
    c0 = conv_params[0][0].shape[0]
    h = x.reshape(B, c0, end_conv_size)            # UnFlatten
    for (w, b) in conv_params:
        h = _ref_convtranspose1d(h, w, b, stride, padding)
        h = jnp.maximum(h, 0.0)                    # ReLU after every transposed conv
    return h


def init_decoder_params(key, hidden_dims=(4, 2, 2), end_ch=2,
                        num_trans_conv_blocks=2, kernel_size=3):
    dims = list(hidden_dims)
    if dims[-1] != end_ch:
        dims.append(end_ch)
    chan_pairs = []
    for i in range(len(dims) - 1):
        c_in = dims[i]
        for _ in range(num_trans_conv_blocks):
            chan_pairs.append((c_in, dims[i + 1]))
            c_in = dims[i + 1]
    params = []
    for (ci, co) in chan_pairs:
        key, wk, bk = jax.random.split(key, 3)
        bound = 1.0 / np.sqrt(ci * kernel_size)
        w = jax.random.uniform(wk, (ci, co, kernel_size), jnp.float32, -bound, bound)
        b = jax.random.uniform(bk, (co,), jnp.float32, -bound, bound)
        params.append((w, b))
    return params


if __name__ == "__main__":
    # Shapes consistent with DECODER(end_ch=2, hidden_dims=[4,2,2],
    # num_trans_conv_blocks=2, k=3, s=2, p=1), with end_conv_size=8:
    # x (B, 4*8) -> UnFlatten (B,4,8) -> 4x [ConvTranspose1d+ReLU] -> (B,2,113)
    batch = 64
    hidden_dims = (4, 2, 2)
    end_ch = 2
    end_conv_size = 8
    stride, padding, kernel_size = 2, 1, 3
    num_trans_conv_blocks = 2

    key = jax.random.PRNGKey(0)
    key, xk = jax.random.split(key)
    x = jax.random.normal(xk, (batch, hidden_dims[0] * end_conv_size), jnp.float32)

    conv_params = init_decoder_params(key, hidden_dims, end_ch,
                                      num_trans_conv_blocks, kernel_size)

    ref = decoder_reference(x, conv_params, end_conv_size, stride, padding)

    # Default fast path: bf16 MXU operands, f32 accumulation/bias/ReLU,
    # f32 output.  batch=64 with the auto tile gives a 4-step "parallel" grid.
    packed = pack_decoder_params(conv_params, end_conv_size, stride, padding)
    out = jax.block_until_ready(decoder_forward(x, packed))
    assert out.shape == ref.shape, (out.shape, ref.shape)
    assert jnp.allclose(out, ref, atol=5e-2, rtol=5e-2), \
        f"max abs err (bf16 ops) {float(jnp.max(jnp.abs(out - ref)))}"

    # Exact f32 verification path.
    packed_f32 = pack_decoder_params(conv_params, end_conv_size, stride,
                                     padding, dot_dtype=jnp.float32)
    out_f32 = jax.block_until_ready(
        decoder_forward(x, packed_f32, dot_dtype=jnp.float32))
    assert jnp.allclose(out_f32, ref, atol=1e-5, rtol=1e-5), \
        f"max abs err (f32) {float(jnp.max(jnp.abs(out_f32 - ref)))}"

    # bf16 output path (halves the dominant HBM writeback stream).
    out_bf16 = jax.block_until_ready(
        decoder_forward(x, packed, out_dtype=jnp.bfloat16))
    assert out_bf16.shape == ref.shape
    assert jnp.allclose(out_bf16.astype(jnp.float32), ref, atol=5e-2, rtol=5e-2), \
        f"max abs err (bf16 out) {float(jnp.max(jnp.abs(out_bf16.astype(jnp.float32) - ref)))}"

    print("KERNEL_OK")
</pallas_src>

<mosaic_0001>
module attributes {stable_mosaic.version = 11 : i64} {
  func.func @_decoder_mlp_kernel(%arg0: i32, %arg1: memref<16x32xbf16, #tpu.memory_space<vmem>>, %arg2: memref<4x128x256xbf16, #tpu.memory_space<vmem>>, %arg3: memref<4x1x256xf32, #tpu.memory_space<vmem>>, %arg4: memref<16x256xf32, #tpu.memory_space<vmem>>) attributes {dimension_semantics = [#tpu.dimension_semantics<parallel>], iteration_bounds = array<i64: 4>, scalar_prefetch = 0 : i64, scratch_operands = 0 : i64, tpu.core_type = #tpu.core_type<tc>, window_params = [{transform_indices = @transform_0, window_bounds = array<i64: 16, 32>}, {pipeline_mode = #tpu.pipeline_mode<synchronous>, transform_indices = @transform_1, window_bounds = array<i64: 4, 128, 256>}, {pipeline_mode = #tpu.pipeline_mode<synchronous>, transform_indices = @transform_2, window_bounds = array<i64: 4, 1, 256>}, {transform_indices = @transform_3, window_bounds = array<i64: 16, 256>}]} {
    %c0 = arith.constant 0 : index
    %c0_0 = arith.constant 0 : index
    %0 = vector.load %arg1[%c0, %c0_0] : memref<16x32xbf16, #tpu.memory_space<vmem>>, vector<16x32xbf16>
    %c0_1 = arith.constant 0 : index
    %c0_2 = arith.constant 0 : index
    %c0_3 = arith.constant 0 : index
    %1 = vector.load %arg2[%c0_1, %c0_2, %c0_3] : memref<4x128x256xbf16, #tpu.memory_space<vmem>>, vector<1x32x128xbf16>
    %2 = vector.shape_cast %1 : vector<1x32x128xbf16> to vector<32x128xbf16>
    %cst = arith.constant dense<0.000000e+00> : vector<16x128xf32>
    %3 = tpu.matmul %0, %2, %cst {dimension_numbers = #tpu.dot_dimension_numbers<[1], [0], [0], [1], [0, 0, 1, 1], [], []>} : vector<16x32xbf16>, vector<32x128xbf16>, vector<16x128xf32> -> vector<16x128xf32>
    %c0_4 = arith.constant 0 : index
    %c0_5 = arith.constant 0 : index
    %c0_6 = arith.constant 0 : index
    %4 = vector.load %arg3[%c0_4, %c0_5, %c0_6] : memref<4x1x256xf32, #tpu.memory_space<vmem>>, vector<1x1x128xf32>
    %5 = vector.shape_cast %4 : vector<1x1x128xf32> to vector<1x128xf32>
    %6 = vector.broadcast %5 : vector<1x128xf32> to vector<16x128xf32>
    %7 = arith.addf %3, %6 : vector<16x128xf32>
    %cst_7 = arith.constant 0.000000e+00 : f32
    %8 = vector.broadcast %cst_7 : f32 to vector<16x128xf32>
    %9 = arith.maximumf %7, %8 : vector<16x128xf32>
    %c1 = arith.constant 1 : index
    %c0_8 = arith.constant 0 : index
    %c0_9 = arith.constant 0 : index
    %10 = vector.load %arg2[%c1, %c0_8, %c0_9] : memref<4x128x256xbf16, #tpu.memory_space<vmem>>, vector<1x128x128xbf16>
    %11 = vector.shape_cast %10 : vector<1x128x128xbf16> to vector<128x128xbf16>
    %12 = arith.truncf %9 : vector<16x128xf32> to vector<16x128xbf16>
    %cst_10 = arith.constant dense<0.000000e+00> : vector<16x128xf32>
    %13 = tpu.matmul %12, %11, %cst_10 {dimension_numbers = #tpu.dot_dimension_numbers<[1], [0], [0], [1], [0, 0, 1, 1], [], []>} : vector<16x128xbf16>, vector<128x128xbf16>, vector<16x128xf32> -> vector<16x128xf32>
    %c1_11 = arith.constant 1 : index
    %c0_12 = arith.constant 0 : index
    %c0_13 = arith.constant 0 : index
    %14 = vector.load %arg3[%c1_11, %c0_12, %c0_13] : memref<4x1x256xf32, #tpu.memory_space<vmem>>, vector<1x1x128xf32>
    %15 = vector.shape_cast %14 : vector<1x1x128xf32> to vector<1x128xf32>
    %16 = vector.broadcast %15 : vector<1x128xf32> to vector<16x128xf32>
    %17 = arith.addf %13, %16 : vector<16x128xf32>
    %cst_14 = arith.constant 0.000000e+00 : f32
    %18 = vector.broadcast %cst_14 : f32 to vector<16x128xf32>
    %19 = arith.maximumf %17, %18 : vector<16x128xf32>
    %c2 = arith.constant 2 : index
    %c0_15 = arith.constant 0 : index
    %c0_16 = arith.constant 0 : index
    %20 = vector.load %arg2[%c2, %c0_15, %c0_16] : memref<4x128x256xbf16, #tpu.memory_space<vmem>>, vector<1x128x128xbf16>
    %21 = vector.shape_cast %20 : vector<1x128x128xbf16> to vector<128x128xbf16>
    %22 = arith.truncf %19 : vector<16x128xf32> to vector<16x128xbf16>
    %cst_17 = arith.constant dense<0.000000e+00> : vector<16x128xf32>
    %23 = tpu.matmul %22, %21, %cst_17 {dimension_numbers = #tpu.dot_dimension_numbers<[1], [0], [0], [1], [0, 0, 1, 1], [], []>} : vector<16x128xbf16>, vector<128x128xbf16>, vector<16x128xf32> -> vector<16x128xf32>
    %c2_18 = arith.constant 2 : index
    %c0_19 = arith.constant 0 : index
    %c0_20 = arith.constant 0 : index
    %24 = vector.load %arg3[%c2_18, %c0_19, %c0_20] : memref<4x1x256xf32, #tpu.memory_space<vmem>>, vector<1x1x128xf32>
    %25 = vector.shape_cast %24 : vector<1x1x128xf32> to vector<1x128xf32>
    %26 = vector.broadcast %25 : vector<1x128xf32> to vector<16x128xf32>
    %27 = arith.addf %23, %26 : vector<16x128xf32>
    %cst_21 = arith.constant 0.000000e+00 : f32
    %28 = vector.broadcast %cst_21 : f32 to vector<16x128xf32>
    %29 = arith.maximumf %27, %28 : vector<16x128xf32>
    %c3 = arith.constant 3 : index
    %c0_22 = arith.constant 0 : index
    %c0_23 = arith.constant 0 : index
    %30 = vector.load %arg2[%c3, %c0_22, %c0_23] : memref<4x128x256xbf16, #tpu.memory_space<vmem>>, vector<1x128x256xbf16>
    %31 = vector.shape_cast %30 : vector<1x128x256xbf16> to vector<128x256xbf16>
    %32 = arith.truncf %29 : vector<16x128xf32> to vector<16x128xbf16>
    %cst_24 = arith.constant dense<0.000000e+00> : vector<16x256xf32>
    %33 = tpu.matmul %32, %31, %cst_24 {dimension_numbers = #tpu.dot_dimension_numbers<[1], [0], [0], [1], [0, 0, 1, 1], [], []>} : vector<16x128xbf16>, vector<128x256xbf16>, vector<16x256xf32> -> vector<16x256xf32>
    %c3_25 = arith.constant 3 : index
    %c0_26 = arith.constant 0 : index
    %c0_27 = arith.constant 0 : index
    %34 = vector.load %arg3[%c3_25, %c0_26, %c0_27] : memref<4x1x256xf32, #tpu.memory_space<vmem>>, vector<1x1x256xf32>
    %35 = vector.shape_cast %34 : vector<1x1x256xf32> to vector<1x256xf32>
    %36 = vector.broadcast %35 : vector<1x256xf32> to vector<16x256xf32>
    %37 = arith.addf %33, %36 : vector<16x256xf32>
    %cst_28 = arith.constant 0.000000e+00 : f32
    %38 = vector.broadcast %cst_28 : f32 to vector<16x256xf32>
    %39 = arith.maximumf %37, %38 : vector<16x256xf32>
    %c0_29 = arith.constant 0 : index
    %c0_30 = arith.constant 0 : index
    %40 = vector.load %arg4[%c0_29, %c0_30] : memref<16x256xf32, #tpu.memory_space<vmem>>, vector<16x256xf32>
    tpu.vector_store %arg4[%c0_29, %c0_30], %39 {strides = array<i32>} : memref<16x256xf32, #tpu.memory_space<vmem>>, vector<16x256xf32>,
    return
  }
  func.func @transform_0(%arg0: i32) -> (i32, i32) {
    %c0_i32 = arith.constant 0 : i32
    %c0_i32_0 = arith.constant 0 : i32
    return %arg0, %c0_i32 : i32, i32
  }
  func.func @transform_1(%arg0: i32) -> (i32, i32, i32) {
    %c0_i32 = arith.constant 0 : i32
    %c0_i32_0 = arith.constant 0 : i32
    %c0_i32_1 = arith.constant 0 : i32
    %c0_i32_2 = arith.constant 0 : i32
    return %c0_i32, %c0_i32_0, %c0_i32_1 : i32, i32, i32
  }
  func.func @transform_2(%arg0: i32) -> (i32, i32, i32) {
    %c0_i32 = arith.constant 0 : i32
    %c0_i32_0 = arith.constant 0 : i32
    %c0_i32_1 = arith.constant 0 : i32
    %c0_i32_2 = arith.constant 0 : i32
    return %c0_i32, %c0_i32_0, %c0_i32_1 : i32, i32, i32
  }
  func.func @transform_3(%arg0: i32) -> (i32, i32) {
    %c0_i32 = arith.constant 0 : i32
    %c0_i32_0 = arith.constant 0 : i32
    return %arg0, %c0_i32 : i32, i32
  }
}

</mosaic_0001>

<bundles_post_ra>
// kernel: tpu_custom_call.1
= control target key start
LH: loop header
LB: loop body
LE: loop exit
PB: predicated region body
PF: predicated region fallthrough
CT: control target
= control target key end

     0   :  { %8 = vsyncpa [#allocation3], 0  ;;  %s1276_s0 = inlined_call_operand.vmem [shape: bf16[64,32], index: 0, kind: input, shape index: {}]   ;;  %s1277_s1 = inlined_call_operand.hbm [shape: bf16[4,128,256], index: 1, kind: input, shape index: {}]   ;;  %s1278_s2 = inlined_call_operand.vmem [shape: f32[4,1,256], index: 2, kind: input, shape index: {}]   ;;  %s1279_s3 = inlined_call_operand.hbm [shape: f32[64,256], index: 3, kind: output, shape index: {}]  }
   0x1   :  { %9 = vsyncpa [#allocation4], 0 }
   0x2   :  { %11 = vsyncpa [#allocation4 + $0x1], 0  ;;  %s1103_s12 = smov 0   ;;  %s1105_s13 = smov 0  }
   0x3   :  { %s1107_s14 = smov 0   ;;  %s1109_s15 = smov 0  }
   0x4 LB: > { %s1124_s16 = sadd.s32 4294967295, %s1072_s15   ;;  %s750_s17 = sadd.s32 4294967294, %s1072_s15   ;;  %s1072_s15 = sphi %s1109_s15, %s1295_s15   ;;  %s1068_s14 = sphi %s1107_s14, %s1294_s14   ;;  %s1064_s13 = sphi %s1105_s13, %s1293_s13   ;;  %s1060_s12 = sphi %s1103_s12, %s1292_s12  }
   0x5   : > { %s1128_s18 = sadd.s32 1, %s1072_s15   ;;  %s92_s19 = sadd.s32 1, %s1068_s14 }
   0x6   : > { %s89_s20 = ssub.s32 %s1072_s15, %s1128_s18  ;;  %p102_p0 = scmp.ne.s32.totalorder %s1068_s14, %s1064_s13 }
   0x7   : > { %p90_p1 = scmp.eq.s32.totalorder %s89_s20, 0  ;;  %p103_p2 = scmp.eq.s32.totalorder %s1124_s16, 3 }
   0x8   : > { %p108_p3 = scmp.ne.s32.totalorder %s1064_s13, %s1060_s12  ;;  %p109_p4 = scmp.eq.s32.totalorder %s750_s17, 3 }
   0x9   : > { %s1139_s21 = scalar_select %p90_p1, %s1068_s14, %s92_s19  }
   0xa   : > { %p1141_p5 = por %p103_p2, %p102_p0  ;;  %p1145_p6 = por %p109_p4, %p108_p3 }
   0xb   : > { %p751_p7 = scmp.ge.s32.totalorder %s1072_s15, 1  ;;  %p116_p8 = scmp.lt.s32.totalorder %s1072_s15, 5 }
   0xc   : > { %s1283_s22 = scalar_select %p1141_p5, 1, 0 }
   0xd   : > { %s1284_s23 = scalar_select %p1145_p6, 1, 0 }
   0xe   : > { %p1280_p9 = scmp.eq.s32.totalorder %s1124_s16, 0  ;;  %p1152_p10 = pnand %p751_p7, %p116_p8 }
   0xf   : > { %s1074_s25 = smov [#allocation2]   ;;  %s978_s30 = scalar_lea.hbm %s1277_s1, 8192 }
  0x10   : > { %s1285_s24 = scalar_select %p1152_p10, 1, 0 }
  0x11   : > { %s128_s26 = sshll.u32 %s1074_s25, 4  ;;  %p884_p11 = pneg %p1152_p10  ;;  %s129_s26 = int_to_ptr.vmem [resolvable:$true] %s128_s26 }
  0x12   : > { %p979_p13 = scmp.ne.s32.totalorder %s1277_s1, %s978_s30  ;;  %p985_p3 = scmp.lt.u32.totalorder %s978_s30, %s1277_s1 }
  0x13   : > { %p1160_p12 = pnand %p1280_p9, %p884_p11 }
  0x15   : > { %p980_p0 = pneg %p1160_p12 }
  0x17   : > { %p981_p1 = pnand %p980_p0, %p979_p13 }
  0x19   : > { %p982_p2 = pneg %p981_p1 }
  0x1b   : > { %p987_p4 = pnand %p985_p3, %p982_p2 }
  0x1d   : > { %990 = shalt.err (!%p987_p4)
}
  0x1e   : > { %s991_s8 = scalar_lea.vmem %s129_s26, 8192  ;;  %p999_p9 = scmp.lt.s32.totalorder %s129_s26, %s129_s26 }
  0x1f   : > { %p992_p7 = scmp.ne.s32.totalorder %s129_s26, %s991_s8  ;;  %p1000_p6 = scmp.lt.s32.totalorder %s991_s8, %s991_s8 }
  0x21   : > { %p994_p8 = pnand %p992_p7, %p980_p0  ;;  %p1001_p5 = por %p1000_p6, %p999_p9 }
  0x23   : > { %p995_p11 = pneg %p994_p8 }
  0x25   : > { %p1002_p10 = pnand %p1001_p5, %p995_p11 }
  0x27   : > { %1005 = shalt.err (!%p1002_p10)
}
  0x28   : > { %s1075_s9 = smov 128   ;;  %s1076_s10 = smov 8  }
  0x29   : > { %887 = dma.hbm_to_vmem [thread:$0]  (!%p1160_p12), %s1277_s1, 8192, %s129_s26, [#allocation3], %s1075_s9, %s1075_s9, %s1076_s10  }
  0x2a   : > { %p1287_p13 = scmp.ne.s32.totalorder %s1285_s24, 0 }
  0x2b   : > { %p1288_p1 = scmp.eq.s32.totalorder (!%p1287_p13), %s1124_s16, 0 }
  0x2c   : > { %156 = sbr.rel (%p1287_p13) target bundleno = 956 (0x3bc), region = 32 }
  0x33   : > { %1051 = dma.done.wait (%p1288_p1), [#allocation3], 8192   ;;  %p1289_p0 = pmov %p1288_p1 }
  0x34   : > { %s757_s19 = sshll.u32 %s1124_s16, 1  ;;  %v1077_v0 = vmov 0.0   ;;  %vm1078_vm0 = vmmov 0   ;;  %v935_v1 = vld [vmem:[#allocation2] ss:$8 sps:$4 sm:$0xff]   ;;  %vm218_vm1 = vcmask 261120  }
  0x35   : > { %1053 = vsyncadd (%p1289_p0), [#allocation3], 4294959104  ;;  %830 = vmatprep.subr.bf16.mxu0 %v1077_v0  ;;  %834 = vmatprep.mubr.msk.bf16.mxu0 %vm1078_vm0, %v1077_v0  ;;  %p181_p5 = scmp.lt.s32.totalorder %s757_s19, 7  ;;  %v936_v2 = vld [vmem:[#allocation2 + $0x10] ss:$8 sps:$4 sm:$0xff]   ;;  %v1079_v56 = vmov 0  }
  0x36   : > { %838 = vmatprep.subr.bf16.mxu1 %v1077_v0  ;;  %854 = vmatprep.mubr.msk.bf16.mxu1 %vm1078_vm0, %v1077_v0  ;;  %v938_v3 = vld [vmem:[#allocation2 + $0x80] ss:$8 sps:$4 sm:$0xff]   ;;  %v939_v5 = vld [vmem:[#allocation2 + $0x90] ss:$8 sps:$4 sm:$0xff]   ;;  %v956_v31 = vld [vmem:[#allocation2 + $0x184] ss:$8 sps:$4 sm:$0xff]  }
  0x37   : > { %s1297_s19 = smov (!%p181_p5, %s757_s19), 7  ;;  %831 = vmatpush3.bf16.msra.mxu0 %v935_v1  ;;  %839 = vmatpush3.bf16.msra.mxu1 %v938_v3  ;;  %v940_v6 = vld [vmem:[#allocation2 + $0xa0] ss:$8 sps:$4 sm:$0xff]   ;;  %v941_v7 = vld [vmem:[#allocation2 + $0xb0] ss:$8 sps:$4 sm:$0xff]   ;;  %v520_v3 = vlaneseq  ;;  %s177_s8 = sand.u32 1, %s1064_s13  }
  0x38   : > { %s758_s20 = sshll.u32 %s1297_s19, 2  ;;  %832 = vmatprep.subr.bf16.mxu0 %v1077_v0  ;;  %840 = vmatprep.subr.bf16.mxu1 %v1077_v0  ;;  %v942_v8 = vld [vmem:[#allocation2 + $0xc0] ss:$8 sps:$4 sm:$0xff]   ;;  %v943_v9 = vld [vmem:[#allocation2 + $0xd0] ss:$8 sps:$4 sm:$0xff]   ;;  %s756_s9 = sshll.u32 %s177_s8, 5 }
  0x39   : > { %s184_s26 = scalar_lea.vmem %s1276_s0, %s758_s20  ;;  %v944_v10 = vld [vmem:[#allocation2 + $0xe0] ss:$8 sps:$4 sm:$0xff]   ;;  %v945_v11 = vld [vmem:[#allocation2 + $0xf0] ss:$8 sps:$4 sm:$0xff]   ;;  %v959_v32 = vld [vmem:[#allocation2 + $0x194] ss:$8 sps:$4 sm:$0xff]  }
  0x3a   : > { %v937_v4 = vld [vmem:[%s184_s26] sm:$0xff]   ;;  %v947_v13 = vld [vmem:[#allocation2 + $0x110] ss:$8 sps:$4 sm:$0xff]   ;;  %v965_v36 = vld [vmem:[#allocation2 + $0x1b4] ss:$8 sps:$4 sm:$0xff]   ;;  %s179_s10 = scalar_lea.vmem [#allocation5], %s756_s9 }
  0x3b   : > { %833 = vmatpush3.bf16.msra.mxu0 %v936_v2  ;;  %841 = vmatpush3.bf16.msra.mxu1 %v939_v5  ;;  %v946_v12 = vld [vmem:[#allocation2 + $0x100] ss:$8 sps:$4 sm:$0xff]   ;;  %v949_v15 = vld [vmem:[#allocation2 + $0x130] ss:$8 sps:$4 sm:$0xff]   ;;  %v962_v34 = vld [vmem:[#allocation2 + $0x1a4] ss:$8 sps:$4 sm:$0xff]  }
  0x3c   : > { %858 = vmatprep.subr.bf16.mxu0 %v1077_v0  ;;  %842 = vmatprep.subr.bf16.mxu1 %v1077_v0  ;;  %v948_v14 = vld [vmem:[#allocation2 + $0x120] ss:$8 sps:$4 sm:$0xff]   ;;  %v951_v17 = vld [vmem:[#allocation2 + $0x150] ss:$8 sps:$4 sm:$0xff]   ;;  %v968_v38 = vld [vmem:[#allocation2 + $0x1c4] ss:$8 sps:$4 sm:$0xff]  }
  0x3d   : > { %v950_v16 = vld [vmem:[#allocation2 + $0x140] ss:$8 sps:$4 sm:$0xff]   ;;  %v953_v29 = vld [vmem:[#allocation2 + $0x170] ss:$8 sps:$4 sm:$0xff]   ;;  %v971_v40 = vld [vmem:[#allocation2 + $0x1d4] ss:$8 sps:$4 sm:$0xff]  }
  0x3e   : > { %835 = vmatmul.mubr.msk.bf16.vlgmr.msra.gmra.mrb[0].mxu0 %vm218_vm1, %v937_v4  ;;  %v759_v18 = vld [vmem:[%s1278_s2] ss:$0 sm:$0xff]  ;;  %v957_v33 = vld [vmem:[#allocation2 + $0x190] ss:$8 sps:$4 sm:$0xff]   ;;  %v765_v42 = vld [vmem:[%s1278_s2 + $0x2] ss:$0 sm:$0xff] }
  0x3f   : > { %874 = vmatprep.mubr.msk.bf16.mxu0 %vm1078_vm0, %v1077_v0  ;;  %843 = vmatpush3.bf16.msra.mxu1 %v940_v6  ;;  %v952_v28 = vld [vmem:[#allocation2 + $0x160] ss:$8 sps:$4 sm:$0xff]   ;;  %v963_v37 = vld [vmem:[#allocation2 + $0x1b0] ss:$8 sps:$4 sm:$0xff]   ;;  %v974_v52 = vld [vmem:[#allocation2 + $0x1e4] ss:$8 sps:$4 sm:$0xff]  }
  0x40   : > { %844 = vmatprep.subr.bf16.mxu1 %v1077_v0  ;;  %859 = vmatpush3.bf16.msra.mxu0 %v946_v12  ;;  %v954_v30 = vld [vmem:[#allocation2 + $0x180] ss:$8 sps:$4 sm:$0xff]   ;;  %v969_v41 = vld [vmem:[#allocation2 + $0x1d0] ss:$8 sps:$4 sm:$0xff]   ;;  %v977_v54 = vld [vmem:[#allocation2 + $0x1f4] ss:$8 sps:$4 sm:$0xff]  }
  0x41   : > { %860 = vmatprep.subr.bf16.mxu0 %v1077_v0  ;;  %v960_v35 = vld [vmem:[#allocation2 + $0x1a0] ss:$8 sps:$4 sm:$0xff]   ;;  %v975_v55 = vld [vmem:[#allocation2 + $0x1f0] ss:$8 sps:$4 sm:$0xff]   ;;  %v775_v57 = vld [vmem:[%s1278_s2 + $0x4] ss:$0 sm:$0xff] }
  0x42   : > { %v966_v39 = vld [vmem:[#allocation2 + $0x1c0] ss:$8 sps:$4 sm:$0xff]   ;;  %v521_v4 = vshrl.u32 %v520_v3, 7  ;;  %v784_v6 = vld [vmem:[%s1278_s2 + $0x6] sm:$0x3]  ;;  %s676_s11 = sshll.u32 %s179_s10, 4  ;;  %s1228_s11 = int_to_ptr.vmem [resolvable:$true] %s676_s11 }
  0x43   : > { %845 = vmatpush3.bf16.msra.mxu1 %v941_v7  ;;  %v972_v53 = vld [vmem:[#allocation2 + $0x1e0] ss:$8 sps:$4 sm:$0xff]   ;;  %s808_s17 = sshll.u32 %s1124_s16, 9  ;;  %s1235_s16 = scalar_lea.sflag [#allocation4], %s177_s8 }
  0x44   : > { %846 = vmatprep.subr.bf16.mxu1 %v1077_v0  ;;  %861 = vmatpush3.bf16.msra.mxu0 %v947_v13  ;;  %v522_v5 = vsub.s32 0, %v521_v4  ;;  %v526_v7 = vsub.s32 1, %v521_v4  ;;  %s1233_s24 = scalar_lea.hbm %s1279_s3, %s808_s17  ;;  %s1006_s25 = scalar_lea.vmem %s1228_s11, 512 }
  0x45   : > { %862 = vmatprep.subr.bf16.mxu0 %v1077_v0  ;;  %p1007_p6 = scmp.ne.s32.totalorder %s1228_s11, %s1006_s25  ;;  %p1290_p9 = scmp.ne.s32.totalorder %s1283_s22, 0 }
  0x46   : > { %s1080_s26 = smov [#allocation5]  }
  0x47   : > { %847 = vmatpush3.bf16.msra.mxu1 %v942_v8  ;;  %v523_v8 = vrot.slane %v784_v6, %v522_v5  ;;  %p1008_p10 = pnand %p1007_p6, %p1290_p9  ;;  %s1010_s27 = sshll.u32 %s1080_s26, 4  ;;  %s1011_s27 = int_to_ptr.vmem [resolvable:$false] %s1010_s27 }
  0x48   : > { %848 = vmatprep.subr.bf16.mxu1 %v1077_v0  ;;  %863 = vmatpush3.bf16.msra.mxu0 %v948_v14  ;;  %s1012_s28 = scalar_lea.vmem %s1011_s27, 1024  ;;  %p1013_p2 = scmp.lt.s32.totalorder %s1228_s11, %s1011_s27 }
  0x49   : > { %864 = vmatprep.subr.bf16.mxu0 %v1077_v0  ;;  %p1009_p12 = pneg %p1008_p10  ;;  %p1014_p3 = scmp.lt.s32.totalorder %s1012_s28, %s1006_s25 }
  0x4b   : > { %849 = vmatpush3.bf16.msra.mxu1 %v943_v9  ;;  %v527_v9 = vrot.slane %v784_v6, %v526_v7  ;;  %p1015_p4 = por %p1014_p3, %p1013_p2 }
  0x4c   : > { %850 = vmatprep.subr.bf16.mxu1 %v1077_v0  ;;  %865 = vmatpush3.bf16.msra.mxu0 %v949_v15 }
  0x4d   : > { %866 = vmatprep.subr.bf16.mxu0 %v1077_v0  ;;  %p1016_p7 = pnand %p1015_p4, %p1009_p12 }
  0x4f   : > { %851 = vmatpush3.bf16.msra.mxu1 %v944_v10 }
  0x50   : > { %852 = vmatprep.subr.bf16.mxu1 %v1077_v0  ;;  %867 = vmatpush3.bf16.msra.mxu0 %v950_v16 }
  0x51   : > { %868 = vmatprep.subr.bf16.mxu0 %v1077_v0 }
  0x53   : > { %853 = vmatpush3.bf16.msra.mxu1 %v945_v11 }
  0x54   : > { %869 = vmatpush3.bf16.msra.mxu0 %v951_v17  ;;  %610 = vmatprep.subr.bf16.mxu1 %v956_v31 }
  0x55   : > { %870 = vmatprep.subr.bf16.mxu0 %v1077_v0 }
  0x58   : > { %871 = vmatpush3.bf16.msra.mxu0 %v952_v28 }
  0x59   : > { %872 = vmatprep.subr.bf16.mxu0 %v1077_v0 }
  0x5c   : > { %873 = vmatpush3.bf16.msra.mxu0 %v953_v29 }
 0x111   : > { %v256_v19 = vpop.f32.mrb[0].mxu0 }
 0x112   : > { %v257_v20 = vadd.f32 %v759_v18, %v256_v19  ;;  %v836_v21 = vpop.f32.mrb[1].mxu0 }
 0x113   : > { %v259_v22 = vpop.f32.mrb[2].mxu0 }
 0x114   : > { %v260_v23 = vadd.f32 %v759_v18, %v259_v22  ;;  %v837_v24 = vpop.f32.mrb[3].mxu0  ;;  %v263_v25 = vmax.f32 %v257_v20, 0.0 }
 0x116   : > { %v264_v26 = vmax.f32 %v260_v23, 0.0 }
 0x118   : > { %v282_v27 = vpack.c.bf16 %v264_v26, %v263_v25 }
 0x11a   : > { %855 = vmatmul.mubr.bf16.vlgmr.msra.gmra.mrb[0].mxu1 %v282_v27 }
 0x11b   : > { %611 = vmatpush1.bf16.msra.mxu1 %v954_v30  ;;  %642 = vmatprep.mubr.bf16.mxu1 %v1079_v56 }
 0x11c   : > { %612 = vmatprep.subr.bf16.mxu1 %v959_v32 }
 0x11f   : > { %613 = vmatpush1.bf16.msra.mxu1 %v957_v33 }
 0x120   : > { %614 = vmatprep.subr.bf16.mxu1 %v962_v34 }
 0x123   : > { %615 = vmatpush1.bf16.msra.mxu1 %v960_v35 }
 0x124   : > { %616 = vmatprep.subr.bf16.mxu1 %v965_v36 }
 0x127   : > { %617 = vmatpush1.bf16.msra.mxu1 %v963_v37 }
 0x128   : > { %618 = vmatprep.subr.bf16.mxu1 %v968_v38 }
 0x12b   : > { %619 = vmatpush1.bf16.msra.mxu1 %v966_v39 }
 0x12c   : > { %620 = vmatprep.subr.bf16.mxu1 %v971_v40 }
 0x12f   : > { %621 = vmatpush1.bf16.msra.mxu1 %v969_v41 }
 0x130   : > { %622 = vmatprep.subr.bf16.mxu1 %v974_v52 }
 0x133   : > { %623 = vmatpush1.bf16.msra.mxu1 %v972_v53 }
 0x134   : > { %624 = vmatprep.subr.bf16.mxu1 %v977_v54 }
 0x137   : > { %625 = vmatpush1.bf16.msra.mxu1 %v975_v55 }
 0x1ed   : > { %v373_v43 = vpop.f32.mrb[0].mxu1 }
 0x1ee   : > { %v374_v44 = vadd.f32 %v765_v42, %v373_v43  ;;  %v856_v45 = vpop.f32.mrb[1].mxu1 }
 0x1ef   : > { %v376_v46 = vpop.f32.mrb[2].mxu1 }
 0x1f0   : > { %v377_v47 = vadd.f32 %v765_v42, %v376_v46  ;;  %v857_v48 = vpop.f32.mrb[3].mxu1  ;;  %v380_v49 = vmax.f32 %v374_v44, 0.0 }
 0x1f2   : > { %v381_v50 = vmax.f32 %v377_v47, 0.0 }
 0x1f4   : > { %v399_v51 = vpack.c.bf16 %v381_v50, %v380_v49 }
 0x1f6   : > { %875 = vmatmul.mubr.bf16.vlgmr.msra.gmra.mrb[4].mxu0 %v399_v51 }
 0x2c9   : > { %v490_v58 = vpop.f32.mrb[4].mxu0 }
 0x2ca   : > { %v491_v59 = vadd.f32 %v775_v57, %v490_v58  ;;  %v876_v60 = vpop.f32.mrb[5].mxu0 }
 0x2cb   : > { %v493_v61 = vpop.f32.mrb[6].mxu0 }
 0x2cc   : > { %v494_v62 = vadd.f32 %v775_v57, %v493_v61  ;;  %v877_v63 = vpop.f32.mrb[7].mxu0  ;;  %v497_v0 = vmax.f32 %v491_v59, 0.0 }
 0x2ce   : > { %v498_v1 = vmax.f32 %v494_v62, 0.0 }
 0x2d0   : > { %v516_v2 = vpack.c.bf16 %v498_v1, %v497_v0 }
 0x2d2   : > { %643 = vmatmul.mubr.bf16.vlgmr.msra.gmra.mrb[4].mxu1 %v516_v2 }
 0x3a5   : > { %v644_v10 = vpop.f32.mrb[4].mxu1 }
 0x3a6   : > { %v645_v11 = vadd.f32 %v644_v10, %v523_v8  ;;  %v646_v12 = vpop.f32.mrb[5].mxu1 }
 0x3a7   : > { %v647_v13 = vadd.f32 %v646_v12, %v527_v9  ;;  %v648_v14 = vpop.f32.mrb[6].mxu1 }
 0x3a8   : > { %v653_v15 = vmax.f32 %v645_v11, 0.0  ;;  %v649_v16 = vadd.f32 %v648_v14, %v523_v8  ;;  %v650_v17 = vpop.f32.mrb[7].mxu1 }
 0x3a9   : > { %v654_v18 = vmax.f32 %v647_v13, 0.0  ;;  %v651_v19 = vadd.f32 %v650_v17, %v527_v9 }
 0x3aa   : > { %657 = vst [vmem:[%s179_s10] sm:$0xff] %v653_v15  ;;  %v655_v20 = vmax.f32 %v649_v16, 0.0 }
 0x3ab   : > { %658 = vst [vmem:[%s179_s10 + $0x8] sm:$0xff] %v654_v18  ;;  %v656_v21 = vmax.f32 %v651_v19, 0.0 }
 0x3ac   : > { %659 = vst [vmem:[%s179_s10 + $0x10] sm:$0xff] %v655_v20 }
 0x3ad   : > { %660 = vst [vmem:[%s179_s10 + $0x18] sm:$0xff] %v656_v21 }
 0x3ae   : > { %1019 = shalt.err (!%p1016_p7)
}
 0x3af   : > { %s1020_s29 = scalar_lea.hbm %s1233_s24, 512  ;;  %s1024_s5 = scalar_lea.hbm %s1279_s3, 2048 }
 0x3b0   : > { %p1021_p8 = scmp.ne.s32.totalorder %s1233_s24, %s1020_s29  ;;  %p1025_p1 = scmp.lt.u32.totalorder %s1233_s24, %s1279_s3 }
 0x3b1   : > { %p1026_p0 = scmp.lt.u32.totalorder %s1024_s5, %s1020_s29  ;;  %p1028_p6 = scmp.lt.u32.totalorder %s1020_s29, %s1233_s24 }
 0x3b2   : > { %p1022_p11 = pnand %p1021_p8, %p1290_p9 }
 0x3b3   : > { %p1027_p5 = por %p1026_p0, %p1025_p1 }
 0x3b4   : > { %p1023_p13 = pneg %p1022_p11 }
 0x3b5   : > { %p1029_p10 = por %p1028_p6, %p1027_p5 }
 0x3b7   : > { %p1030_p12 = pnand %p1029_p10, %p1023_p13 }
 0x3b9   : > { %1033 = shalt.err (!%p1030_p12)
}
 0x3ba   : > { %s1081_s8 = smov 256   ;;  %s1082_s9 = smov 16  }
 0x3bb   : > { %882 = dma.vmem_to_hbm [thread:$0]  (%p1290_p9), %s1228_s11, 512, %s1233_s24, %s1235_s16, %s1081_s8, %s1081_s8, %s1082_s9  }
 0x3bc PF: > { %p894_p2 = scmp.ge.s32.totalorder %s1072_s15, 2  ;;  %s691_s10 = sand.u32 1, %s1060_s12  }
 0x3bd   : > { %p1291_p3 = scmp.ne.s32.totalorder %s1284_s23, 0  ;;  %s692_s17 = scalar_lea.sflag [#allocation4], %s691_s10 }
 0x3bf   : > { %p889_p4 = pnand %p894_p2, %p1291_p3 }
 0x3c1   : > { %1055 = dma.done.wait (!%p889_p4), %s692_s17, 512  }
 0x3c2   : > { %1057 = vsyncadd (!%p889_p4), %s692_s17, 4294966784  ;;  %p14_p7 = scmp.ge.s32.totalorder %s1128_s18, 6   ;;  %s1292_s12 = smov %s1064_s13 }
 0x3c3   : > { %s1293_s13 = smov %s1068_s14  ;;  %s1294_s14 = smov %s1139_s21 }
 0x3c4   : > { %s1295_s15 = smov %s1128_s18  ;;  %16 = sbr.rel (!%p14_p7) target bundleno = 4 (0x4), region = 78 }
 0x3cb   :  { %697 = vsyncpa [#allocation3], 1 }
 0x3cc   :  { %699 = vsyncpa [#allocation3 + $0x1], 1 }
 0x3cd   :  { %700 = vsyncpa [#allocation4], 1 }
 0x3ce   :  { %702 = vsyncpa [#allocation4 + $0x1], 1 }

</bundles_post_ra>
